<compile_context>
chip_gen: v7x
topology: tpu7x:2x2x1
jax: 0.10.0
libtpu: 0.0.40
codegen_flags: <defaults>
</compile_context>

<pallas_src>
import numpy as np
import jax
import jax.numpy as jnp
from jax.experimental import pallas as pl
from jax.experimental.pallas import tpu as pltpu


# ----------------------------------------------------------------------------
# Fused kernel: one grid step == one batch item
# ----------------------------------------------------------------------------
def ca_layer_kernel(att_ref, main_ref, w1_ref, b1_ref, w2_ref, b2_ref, o_ref):
    # att_ref : (1, Ca, Pa)   main_ref: (1, C, P)   o_ref: (1, C, P)
    # w1: (mid, Ca)  b1: (mid, 1)  w2: (C, mid)  b2: (C, 1)
    att = att_ref[0]                                          # (Ca, Pa)
    avg = jnp.mean(att, axis=-1, keepdims=True)               # (Ca, 1)  global avg pool (XLU)

    z1 = jnp.dot(w1_ref[...], avg,
                 preferred_element_type=jnp.float32) + b1_ref[...]   # (mid, 1)
    z1 = jnp.maximum(z1, 0.0)                                 # ReLU (VPU)

    z2 = jnp.dot(w2_ref[...], z1,
                 preferred_element_type=jnp.float32) + b2_ref[...]   # (C, 1)
    y = 1.0 / (1.0 + jnp.exp(-z2))                            # sigmoid (EUP exp + recip)

    # channel-wise scale, broadcast of (C,1) across the lane (pixel) axis
    o_ref[0] = (main_ref[0] * y).astype(o_ref.dtype)


# ----------------------------------------------------------------------------
# Wrapper
# ----------------------------------------------------------------------------
def ca_layer_forward(main_feature, params, attention_feature=None):
    """main_feature: (N, C, H, W) NCHW. attention_feature defaults to main_feature."""
    if attention_feature is None:
        attention_feature = main_feature
    w1, b1, w2, b2 = params["w1"], params["b1"], params["w2"], params["b2"]

    N, C, H, W = main_feature.shape
    Na, Ca, Ha, Wa = attention_feature.shape
    P, Pa = H * W, Ha * Wa
    mid = w1.shape[0]

    main3 = main_feature.reshape(N, C, P)          # reshape only -- no transpose needed
    att3 = attention_feature.reshape(N, Ca, Pa)

    out = pl.pallas_call(
        ca_layer_kernel,
        out_shape=jax.ShapeDtypeStruct((N, C, P), main_feature.dtype),
        grid=(N,),
        in_specs=[
            pl.BlockSpec((1, Ca, Pa), lambda n: (n, 0, 0)),
            pl.BlockSpec((1, C, P), lambda n: (n, 0, 0)),
            pl.BlockSpec((mid, Ca), lambda n: (0, 0)),
            pl.BlockSpec((mid, 1), lambda n: (0, 0)),
            pl.BlockSpec((C, mid), lambda n: (0, 0)),
            pl.BlockSpec((C, 1), lambda n: (0, 0)),
        ],
        out_specs=pl.BlockSpec((1, C, P), lambda n: (n, 0, 0)),
        compiler_params=pltpu.CompilerParams(dimension_semantics=("parallel",)),
    )(att3, main3, w1, b1, w2, b2)
    return out.reshape(N, C, H, W)


# ----------------------------------------------------------------------------
# Deterministic parameter init (kaiming_normal_ fan_out, like the PyTorch module)
# ----------------------------------------------------------------------------
def make_params(key, main_channel, reduction=16, attention_channel=None):
    if attention_channel is None:
        attention_channel = main_channel
    mid_c = max(8, main_channel // reduction)
    k1, k2, k3, k4 = jax.random.split(key, 4)
    # conv weight (out, in, 1, 1) flattened to (out, in); fan_out = out_channels
    w1 = jax.random.normal(k1, (mid_c, attention_channel), jnp.float32) * np.sqrt(2.0 / mid_c)
    w2 = jax.random.normal(k2, (main_channel, mid_c), jnp.float32) * np.sqrt(2.0 / main_channel)
    # biases pre-shaped as columns (C, 1) so the kernel adds them with no reshape
    b1 = (jax.random.uniform(k3, (mid_c, 1), jnp.float32) - 0.5) * 0.2
    b2 = (jax.random.uniform(k4, (main_channel, 1), jnp.float32) - 0.5) * 0.2
    return {"w1": w1, "b1": b1, "w2": w2, "b2": b2}


# ----------------------------------------------------------------------------
# Pure-JAX reference (same math, no Pallas)
# ----------------------------------------------------------------------------
def ca_layer_ref(main_feature, params, attention_feature=None):
    if attention_feature is None:
        attention_feature = main_feature
    w1, b1, w2, b2 = params["w1"], params["b1"], params["w2"], params["b2"]
    y = jnp.mean(attention_feature, axis=(2, 3))                # (N, Ca) adaptive avg pool to 1x1
    y = jnp.maximum(y @ w1.T + b1[:, 0], 0.0)                   # conv1x1 + ReLU
    y = jax.nn.sigmoid(y @ w2.T + b2[:, 0])                     # conv1x1 + Sigmoid
    return main_feature * y[:, :, None, None]


# ----------------------------------------------------------------------------
if __name__ == "__main__":
    key = jax.random.PRNGKey(0)
    k_params, k_x = jax.random.split(key)

    # main_channel=32, reduction=16 -> mid_c = max(8, 2) = 8 ; spatial 16x16 -> P = 256
    N, C, H, W = 2, 32, 16, 16
    params = make_params(k_params, main_channel=C, reduction=16)
    x = jax.random.normal(k_x, (N, C, H, W), jnp.float32)

    fwd = jax.jit(lambda m, p: ca_layer_forward(m, p))          # attention_feature=None path
    out = jax.block_until_ready(fwd(x, params))

    ref = jax.block_until_ready(ca_layer_ref(x, params))

    assert out.shape == (N, C, H, W), out.shape
    assert np.allclose(np.asarray(out), np.asarray(ref), rtol=1e-5, atol=1e-5), (
        "Pallas CALayer output mismatch vs reference")

    print("KERNEL_OK")
</pallas_src>

<mosaic_0001>
module attributes {stable_mosaic.version = 11 : i64} {
  func.func @ca_layer_kernel(%arg0: i32, %arg1: memref<1x32x256xf32, #tpu.memory_space<vmem>>, %arg2: memref<1x32x256xf32, #tpu.memory_space<vmem>>, %arg3: memref<8x32xf32, #tpu.memory_space<vmem>>, %arg4: memref<8x1xf32, #tpu.memory_space<vmem>>, %arg5: memref<32x8xf32, #tpu.memory_space<vmem>>, %arg6: memref<32x1xf32, #tpu.memory_space<vmem>>, %arg7: memref<1x32x256xf32, #tpu.memory_space<vmem>>) attributes {dimension_semantics = [#tpu.dimension_semantics<parallel>], iteration_bounds = array<i64: 2>, scalar_prefetch = 0 : i64, scratch_operands = 0 : i64, tpu.core_type = #tpu.core_type<tc>, window_params = [{transform_indices = @transform_0, window_bounds = array<i64: 1, 32, 256>}, {transform_indices = @transform_1, window_bounds = array<i64: 1, 32, 256>}, {pipeline_mode = #tpu.pipeline_mode<synchronous>, transform_indices = @transform_2, window_bounds = array<i64: 8, 32>}, {pipeline_mode = #tpu.pipeline_mode<synchronous>, transform_indices = @transform_3, window_bounds = array<i64: 8, 1>}, {pipeline_mode = #tpu.pipeline_mode<synchronous>, transform_indices = @transform_4, window_bounds = array<i64: 32, 8>}, {pipeline_mode = #tpu.pipeline_mode<synchronous>, transform_indices = @transform_5, window_bounds = array<i64: 32, 1>}, {transform_indices = @transform_6, window_bounds = array<i64: 1, 32, 256>}]} {
    %c0 = arith.constant 0 : index
    %c0_0 = arith.constant 0 : index
    %c0_1 = arith.constant 0 : index
    %0 = vector.load %arg1[%c0, %c0_0, %c0_1] : memref<1x32x256xf32, #tpu.memory_space<vmem>>, vector<1x32x256xf32>
    %1 = vector.shape_cast %0 : vector<1x32x256xf32> to vector<32x256xf32>
    %cst = arith.constant dense<0.000000e+00> : vector<32xf32>
    %2 = vector.multi_reduction <add>, %1, %cst [1] : vector<32x256xf32> to vector<32xf32>
    %3 = vector.shape_cast %2 : vector<32xf32> to vector<32x1xf32>
    %cst_2 = arith.constant 2.560000e+02 : f32
    %4 = vector.broadcast %cst_2 : f32 to vector<32x1xf32>
    %5 = arith.divf %3, %4 : vector<32x1xf32>
    %c0_3 = arith.constant 0 : index
    %c0_4 = arith.constant 0 : index
    %6 = vector.load %arg3[%c0_3, %c0_4] : memref<8x32xf32, #tpu.memory_space<vmem>>, vector<8x32xf32>
    %cst_5 = arith.constant dense<0.000000e+00> : vector<8x1xf32>
    %7 = tpu.matmul %6, %5, %cst_5 {dimension_numbers = #tpu.dot_dimension_numbers<[1], [0], [0], [1], [0, 0, 1, 1], [], []>} : vector<8x32xf32>, vector<32x1xf32>, vector<8x1xf32> -> vector<8x1xf32>
    %c0_6 = arith.constant 0 : index
    %c0_7 = arith.constant 0 : index
    %8 = vector.load %arg4[%c0_6, %c0_7] : memref<8x1xf32, #tpu.memory_space<vmem>>, vector<8x1xf32>
    %9 = arith.addf %7, %8 : vector<8x1xf32>
    %cst_8 = arith.constant 0.000000e+00 : f32
    %10 = vector.broadcast %cst_8 : f32 to vector<8x1xf32>
    %11 = arith.maximumf %9, %10 : vector<8x1xf32>
    %c0_9 = arith.constant 0 : index
    %c0_10 = arith.constant 0 : index
    %12 = vector.load %arg5[%c0_9, %c0_10] : memref<32x8xf32, #tpu.memory_space<vmem>>, vector<32x8xf32>
    %cst_11 = arith.constant dense<0.000000e+00> : vector<32x1xf32>
    %13 = tpu.matmul %12, %11, %cst_11 {dimension_numbers = #tpu.dot_dimension_numbers<[1], [0], [0], [1], [0, 0, 1, 1], [], []>} : vector<32x8xf32>, vector<8x1xf32>, vector<32x1xf32> -> vector<32x1xf32>
    %c0_12 = arith.constant 0 : index
    %c0_13 = arith.constant 0 : index
    %14 = vector.load %arg6[%c0_12, %c0_13] : memref<32x1xf32, #tpu.memory_space<vmem>>, vector<32x1xf32>
    %15 = arith.addf %13, %14 : vector<32x1xf32>
    %cst_14 = arith.constant 0.000000e+00 : f32
    %16 = vector.broadcast %cst_14 : f32 to vector<32x1xf32>
    %17 = arith.subf %16, %15 : vector<32x1xf32>
    %18 = math.exp %17 : vector<32x1xf32>
    %cst_15 = arith.constant 1.000000e+00 : f32
    %19 = vector.broadcast %cst_15 : f32 to vector<32x1xf32>
    %20 = arith.addf %19, %18 : vector<32x1xf32>
    %cst_16 = arith.constant 1.000000e+00 : f32
    %21 = vector.broadcast %cst_16 : f32 to vector<32x1xf32>
    %22 = arith.divf %21, %20 : vector<32x1xf32>
    %c0_17 = arith.constant 0 : index
    %c0_18 = arith.constant 0 : index
    %c0_19 = arith.constant 0 : index
    %23 = vector.load %arg2[%c0_17, %c0_18, %c0_19] : memref<1x32x256xf32, #tpu.memory_space<vmem>>, vector<1x32x256xf32>
    %24 = vector.shape_cast %23 : vector<1x32x256xf32> to vector<32x256xf32>
    %25 = vector.broadcast %22 : vector<32x1xf32> to vector<32x256xf32>
    %26 = arith.mulf %24, %25 : vector<32x256xf32>
    %c0_20 = arith.constant 0 : index
    %c0_21 = arith.constant 0 : index
    %c0_22 = arith.constant 0 : index
    %27 = vector.load %arg7[%c0_20, %c0_21, %c0_22] : memref<1x32x256xf32, #tpu.memory_space<vmem>>, vector<1x32x256xf32>
    %28 = vector.shape_cast %27 : vector<1x32x256xf32> to vector<32x256xf32>
    %29 = vector.shape_cast %26 : vector<32x256xf32> to vector<1x32x256xf32>
    tpu.vector_store %arg7[%c0_20, %c0_21, %c0_22], %29 {strides = array<i32>} : memref<1x32x256xf32, #tpu.memory_space<vmem>>, vector<1x32x256xf32>,
    return
  }
  func.func @transform_0(%arg0: i32) -> (i32, i32, i32) {
    %c0_i32 = arith.constant 0 : i32
    %c0_i32_0 = arith.constant 0 : i32
    %c0_i32_1 = arith.constant 0 : i32
    return %arg0, %c0_i32, %c0_i32_0 : i32, i32, i32
  }
  func.func @transform_1(%arg0: i32) -> (i32, i32, i32) {
    %c0_i32 = arith.constant 0 : i32
    %c0_i32_0 = arith.constant 0 : i32
    %c0_i32_1 = arith.constant 0 : i32
    return %arg0, %c0_i32, %c0_i32_0 : i32, i32, i32
  }
  func.func @transform_2(%arg0: i32) -> (i32, i32) {
    %c0_i32 = arith.constant 0 : i32
    %c0_i32_0 = arith.constant 0 : i32
    %c0_i32_1 = arith.constant 0 : i32
    return %c0_i32, %c0_i32_0 : i32, i32
  }
  func.func @transform_3(%arg0: i32) -> (i32, i32) {
    %c0_i32 = arith.constant 0 : i32
    %c0_i32_0 = arith.constant 0 : i32
    %c0_i32_1 = arith.constant 0 : i32
    return %c0_i32, %c0_i32_0 : i32, i32
  }
  func.func @transform_4(%arg0: i32) -> (i32, i32) {
    %c0_i32 = arith.constant 0 : i32
    %c0_i32_0 = arith.constant 0 : i32
    %c0_i32_1 = arith.constant 0 : i32
    return %c0_i32, %c0_i32_0 : i32, i32
  }
  func.func @transform_5(%arg0: i32) -> (i32, i32) {
    %c0_i32 = arith.constant 0 : i32
    %c0_i32_0 = arith.constant 0 : i32
    %c0_i32_1 = arith.constant 0 : i32
    return %c0_i32, %c0_i32_0 : i32, i32
  }
  func.func @transform_6(%arg0: i32) -> (i32, i32, i32) {
    %c0_i32 = arith.constant 0 : i32
    %c0_i32_0 = arith.constant 0 : i32
    %c0_i32_1 = arith.constant 0 : i32
    return %arg0, %c0_i32, %c0_i32_0 : i32, i32, i32
  }
}

</mosaic_0001>

<bundles_post_ra>
// kernel: _lambda_.1
= control target key start
LH: loop header
LB: loop body
LE: loop exit
PB: predicated region body
PF: predicated region fallthrough
CT: control target
= control target key end

     0   :  { %s748_s21 = smov 0   ;;  %s803_s0 = inlined_call_operand.vmem [shape: f32[2,32,256], index: 0, kind: input, shape index: {}, may-alias: {0,1}]   ;;  %s804_s1 = inlined_call_operand.vmem [shape: f32[2,32,256], index: 1, kind: input, shape index: {}, may-alias: {0,1}]   ;;  %s805_s2 = inlined_call_operand.vmem [shape: f32[8,32], index: 2, kind: input, shape index: {}]   ;;  %s806_s3 = inlined_call_operand.vmem [shape: f32[8,1], index: 3, kind: input, shape index: {}]   ;;  %s807_s4 = inlined_call_operand.vmem [shape: f32[32,8], index: 4, kind: input, shape index: {}]   ;;  %s808_s5 = inlined_call_operand.vmem [shape: f32[32,1], index: 5, kind: input, shape index: {}]   ;;  %s809_s6 = inlined_call_operand.vmem [shape: f32[2,32,256], index: 6, kind: output, shape index: {}]  }
   0x1 LB: > { %s615_s22 = sadd.s32 4294967295, %s707_s21   ;;  %p619_p0 = scmp.ge.s32.totalorder %s707_s21, 1  ;;  %s707_s21 = sphi %s748_s21, %s16_s21  }
   0x2   : > { %p222_p1 = scmp.lt.s32.totalorder %s707_s21, 3 }
   0x4   : > { %p223_p2 = pnand %p619_p0, %p222_p1 }
   0x5   : > { %p257_p3 = scmp.lt.s32.totalorder (!%p223_p2), %s615_s22, 1  ;;  %v709_v12 = vmov (!%p223_p2), 0.0|0.0   ;;  %vm710_vm0 = vmmov (!%p223_p2), 0   ;;  %v711_v13 = vmov (!%p223_p2), 0.0   ;;  %v297_v24 = vld [vmem:[%s805_s2] sm:$0xff] (!%p223_p2)  ;;  %vm299_vm1 = vcmask (!%p223_p2), 261120  }
   0x6   : > { %226 = sbr.rel (%p223_p2) target bundleno = 777 (0x309), region = 44  ;;  %665 = vmatprep.subr.bf16.mxu0 (!%p223_p2), %v709_v12  ;;  %654 = vmatprep.mubr.msk.f32.mxu0 (!%p223_p2), %vm710_vm0, %v711_v13  ;;  %v374_v25 = vld [vmem:[%s807_s4] sm:$0xff] (!%p223_p2)  ;;  %vm382_vm2 = vcmask (!%p223_p2), 64512   ;;  %v375_v31 = vld [vmem:[%s807_s4 + $0x8] sm:$0xff] (!%p223_p2)  ;;  %v376_v32 = vld [vmem:[%s807_s4 + $0x10] sm:$0xff] (!%p223_p2)  ;;  %v712_v34 = vmov (!%p223_p2), 0  }
   0x7   : > { %659 = vmatprep.mubr.msk.f32.mxu1 (!%p223_p2), %vm382_vm2, %v374_v25  ;;  %v298_v26 = vld [vmem:[%s806_s3] sm:$0xff] (!%p223_p2)  ;;  %v377_v33 = vld [vmem:[%s807_s4 + $0x18] sm:$0xff] (!%p223_p2)  ;;  %684 = vset.pattern.permute.xlu1 (!%p223_p2), %v712_v34  ;;  %v379_v35 = vld [vmem:[%s808_s5 + $0x8] sm:$0xff] (!%p223_p2) }
   0x8   : > { %683 = vset.pattern.permute.xlu0 (!%p223_p2), %v712_v34  ;;  %v378_v36 = vld [vmem:[%s808_s5] sm:$0xff] (!%p223_p2)  ;;  %v381_v41 = vld [vmem:[%s808_s5 + $0x18] sm:$0xff] (!%p223_p2)  ;;  %v380_v43 = vld [vmem:[%s808_s5 + $0x10] sm:$0xff] (!%p223_p2) }
   0xd   : > { %s811_s22 = smov (!%p257_p3, %s615_s22), 1 }
   0xe   : > { %s756_s23 = sshll.u32 %s811_s22, 6 }
   0xf   : > { %s261_s26 = scalar_lea.vmem %s803_s0, %s756_s23  ;;  %s266_s27 = scalar_lea.vmem %s804_s1, %s756_s23 }
  0x10   : > { %v276_v0 = vld [vmem:[%s261_s26 + $0x20] sm:$0xff]  ;;  %v277_v1 = vld [vmem:[%s261_s26 + $0x28] sm:$0xff]  ;;  %v278_v5 = vld [vmem:[%s261_s26 + $0x30] sm:$0xff]  ;;  %s271_s30 = scalar_lea.vmem %s809_s6, %s756_s23 }
  0x11   : > { %v272_v2 = vld [vmem:[%s261_s26] sm:$0xff]  ;;  %v286_v3 = vadd.f32 %v277_v1, %v276_v0  ;;  %v273_v4 = vld [vmem:[%s261_s26 + $0x8] sm:$0xff]  ;;  %v279_v6 = vld [vmem:[%s261_s26 + $0x38] sm:$0xff] }
  0x12   : > { %v280_v7 = vadd.f32 %v273_v4, %v272_v2  ;;  %v274_v8 = vld [vmem:[%s261_s26 + $0x10] sm:$0xff]  ;;  %v275_v9 = vld [vmem:[%s261_s26 + $0x18] sm:$0xff]  ;;  %v289_v10 = vadd.f32 %v279_v6, %v278_v5  ;;  %v504_v5 = vld [vmem:[%s266_s27] sm:$0xff] }
  0x13   : > { %287 = vadd.xlane.f32.xlu1 %v286_v3  ;;  %v283_v11 = vadd.f32 %v275_v9, %v274_v8  ;;  %v506_v3 = vld [vmem:[%s266_s27 + $0x10] sm:$0xff]  ;;  %v507_v4 = vld [vmem:[%s266_s27 + $0x18] sm:$0xff]  ;;  %v505_v6 = vld [vmem:[%s266_s27 + $0x8] sm:$0xff] }
  0x14   : > { %281 = vadd.xlane.f32.xlu0 %v280_v7  ;;  %v508_v13 = vld [vmem:[%s266_s27 + $0x20] sm:$0xff] }
  0x17   : > { %290 = vadd.xlane.f32.xlu1 %v289_v10 }
  0x18   : > { %284 = vadd.xlane.f32.xlu0 %v283_v11 }
  0xa0   : > { %v288_v14 = vpop.xlane.xlu1 %287 }
  0xa1   : > { %v282_v15 = vpop.xlane.xlu0 %281  ;;  %v295_v20 = vmul.f32 0.00390625, %v288_v14  ;;  %v509_v14 = vld [vmem:[%s266_s27 + $0x28] sm:$0xff] }
  0xa2   : > { %v293_v18 = vmul.f32 0.00390625, %v282_v15 }
  0xa4   : > { %v291_v16 = vpop.xlane.xlu1 %290 }
  0xa5   : > { %v285_v17 = vpop.xlane.xlu0 %284  ;;  %v296_v21 = vmul.f32 0.00390625, %v291_v16 }
  0xa6   : > { %v294_v19 = vmul.f32 0.00390625, %v285_v17 }
  0xa7   : > { %v669_v23 = vpack.c.bf16 %v296_v21, %v295_v20 }
  0xa8   : > { %v666_v22 = vpack.c.bf16 %v294_v19, %v293_v18  ;;  %v510_v18 = vld [vmem:[%s266_s27 + $0x30] sm:$0xff]  ;;  %v511_v19 = vld [vmem:[%s266_s27 + $0x38] sm:$0xff] }
  0xaa   : > { %667 = vmatpush3.bf16.msra.mxu0 %v666_v22 }
  0xab   : > { %668 = vmatprep.subr.bf16.mxu0 %v709_v12 }
  0xae   : > { %670 = vmatpush3.bf16.msra.mxu0 %v669_v23 }
  0xb1   : > { %655 = vmatmul.mubr.msk.f32.vlgmr.msra.gmra.mrb[0].mxu0 %vm299_vm1, %v297_v24 }
 0x184   : > { %v369_v27 = vpop.f32.mrb[0].mxu0 }
 0x185   : > { %v370_v28 = vadd.f32 %v369_v27, %v298_v26  ;;  %v656_v29 = vpop.f32.mrb[1].mxu0 }
 0x187   : > { %v373_v30 = vmax.f32 %v370_v28, 0.0 }
 0x189   : > { %657 = vmatprep.subr.mxu1 %v373_v30 }
 0x18a   : > { %658 = vmatpush3.msra.mxu1 %v373_v30 }
 0x18b   : > { %660 = vmatmul.mubr.msk.f32.vlgmr.msra.gmra.mrb[0].mxu1 %vm382_vm2, %v375_v31 }
 0x18c   : > { %662 = vmatprep.mubr.msk.f32.mxu1 %vm382_vm2, %v376_v32 }
 0x18f   : > { %663 = vmatmul.mubr.msk.f32.gmra.mrb[2].mxu1 %vm382_vm2, %v377_v33 }
 0x25e   : > { %v661_v37 = vpop.f32.mrb[0].mxu1 }
 0x25f   : > { %v467_v38 = vadd.f32 %v661_v37, %v379_v35  ;;  %v461_v39 = vpop.f32.mrb[1].mxu1 }
 0x260   : > { %v462_v40 = vadd.f32 %v461_v39, %v378_v36 }
 0x261   : > { %v481_v42 = vsub.f32 0.0, %v467_v38 }
 0x262   : > { %v480_v44 = vsub.f32 0.0, %v462_v40  ;;  %v664_v45 = vpop.f32.mrb[2].mxu1 }
 0x263   : > { %v486_v46 = vmul.f32 1.442695, %v481_v42  ;;  %v477_v47 = vadd.f32 %v664_v45, %v381_v41  ;;  %v471_v48 = vpop.f32.mrb[3].mxu1 }
 0x264   : > { %v484_v49 = vmul.f32 1.442695, %v480_v44  ;;  %v472_v50 = vadd.f32 %v471_v48, %v380_v43 }
 0x265   : > { %685 = vpow2.f32 %v486_v46  ;;  %v483_v51 = vsub.f32 0.0, %v477_v47 }
 0x266   : > { %687 = vpow2.f32 %v484_v49  ;;  %v482_v52 = vsub.f32 0.0, %v472_v50 }
 0x267   : > { %v490_v53 = vmul.f32 1.442695, %v483_v51 }
 0x268   : > { %v488_v54 = vmul.f32 1.442695, %v482_v52 }
 0x269   : > { %689 = vpow2.f32 %v490_v53 }
 0x26a   : > { %691 = vpow2.f32 %v488_v54 }
 0x26f   : > { %v686_v55 = vpop.eup %685 }
 0x270   : > { %v688_v56 = vpop.eup %687  ;;  %v493_v57 = vadd.f32 1.0, %v686_v55 }
 0x271   : > { %v492_v58 = vadd.f32 1.0, %v688_v56 }
 0x272   : > { %693 = vrcp.f32 %v493_v57 }
 0x273   : > { %v690_v59 = vpop.eup %689  ;;  %695 = vrcp.f32 %v492_v58 }
 0x274   : > { %v692_v60 = vpop.eup %691  ;;  %v495_v62 = vadd.f32 1.0, %v690_v59 }
 0x275   : > { %v494_v61 = vadd.f32 1.0, %v692_v60 }
 0x277   : > { %697 = vrcp.f32 %v494_v61 }
 0x278   : > { %699 = vrcp.f32 %v495_v62 }
 0x27c   : > { %v694_v63 = vpop.eup %693 }
 0x27d   : > { %v696_v0 = vpop.eup %695  ;;  %519 = vperm.xlu1 %684, %v694_v63  }
 0x27e   : > { %514 = vperm.xlu0 %683, %v696_v0  }
 0x281   : > { %v698_v1 = vpop.eup %697 }
 0x282   : > { %524 = vperm.xlu1 %684, %v698_v1   ;;  %v700_v2 = vpop.eup %699 }
 0x286   : > { %529 = vperm.xlu1 %684, %v700_v2  }
 0x2fc   : > { %v520_v7 = vpop.permute.xlu1 %519 }
 0x2fd   : > { %v534_v8 = vmul.f32 %v520_v7, %v506_v3  ;;  %v535_v9 = vmul.f32 %v520_v7, %v507_v4  ;;  %v515_v10 = vpop.permute.xlu0 %514 }
 0x2fe   : > { %v532_v11 = vmul.f32 %v515_v10, %v504_v5  ;;  %v533_v12 = vmul.f32 %v515_v10, %v505_v6 }
 0x2ff   : > { %542 = vst [vmem:[%s271_s30 + $0x10] sm:$0xff] %v534_v8  ;;  %543 = vst [vmem:[%s271_s30 + $0x18] sm:$0xff] %v535_v9 }
 0x300   : > { %540 = vst [vmem:[%s271_s30] sm:$0xff] %v532_v11  ;;  %541 = vst [vmem:[%s271_s30 + $0x8] sm:$0xff] %v533_v12 }
 0x301   : > { %v525_v15 = vpop.permute.xlu1 %524 }
 0x302   : > { %v536_v16 = vmul.f32 %v525_v15, %v508_v13  ;;  %v537_v17 = vmul.f32 %v525_v15, %v509_v14 }
 0x304   : > { %544 = vst [vmem:[%s271_s30 + $0x20] sm:$0xff] %v536_v16  ;;  %545 = vst [vmem:[%s271_s30 + $0x28] sm:$0xff] %v537_v17 }
 0x305   : > { %v530_v20 = vpop.permute.xlu1 %529 }
 0x306   : > { %v538_v21 = vmul.f32 %v530_v20, %v510_v18  ;;  %v539_v22 = vmul.f32 %v530_v20, %v511_v19 }
 0x308   : > { %546 = vst [vmem:[%s271_s30 + $0x30] sm:$0xff] %v538_v21  ;;  %547 = vst [vmem:[%s271_s30 + $0x38] sm:$0xff] %v539_v22 }
 0x309 PF: > { %s16_s21 = sadd.s32 1, %s707_s21  }
 0x30a   : > { %p13_p4 = scmp.ge.s32.totalorder %s16_s21, 4  }
 0x30c   :  { %15 = sbr.rel (!%p13_p4) target bundleno = 1 (0x1), region = 77 }

</bundles_post_ra>
